<compile_context>
chip_gen: v6e
topology: v6e:2x2x1
jax: 0.10.0
libtpu: 0.0.40
codegen_flags: <defaults>
</compile_context>

<pallas_src>
import functools
import math

import jax
import jax.numpy as jnp
from jax.experimental import pallas as pl
from jax.experimental.pallas import tpu as pltpu


def _round_up(x, m):
    return ((x + m - 1) // m) * m


def _tpu_vmem_bytes():
    """Physical per-TensorCore VMEM; conservative 64 MiB fallback (v7x)."""
    try:
        return int(pltpu.get_tpu_info().vmem_capacity_bytes)
    except Exception:
        return 64 << 20


_BUFFERED_OK = None


def _buffered_supported():
    """Probe pipeline_mode=pl.Buffered(1) ONCE with a tiny kernel."""
    global _BUFFERED_OK
    if _BUFFERED_OK is None:
        try:
            def _k(a_ref, b_ref, o_ref):
                o_ref[...] = a_ref[...] + b_ref[...]

            f = pl.pallas_call(
                _k,
                out_shape=jax.ShapeDtypeStruct((8, 128), jnp.float32),
                grid_spec=pltpu.PrefetchScalarGridSpec(
                    num_scalar_prefetch=0,
                    grid=(1,),
                    in_specs=[
                        pl.BlockSpec((8, 128), lambda i: (0, 0)),
                        pl.BlockSpec((8, 128), lambda i: (0, 0),
                                     pipeline_mode=pl.Buffered(1)),
                    ],
                    out_specs=pl.BlockSpec((8, 128), lambda i: (0, 0)),
                ),
            )
            z = jnp.zeros((8, 128), jnp.float32)
            jax.block_until_ready(f(z, z))
            _BUFFERED_OK = True
        except Exception:
            _BUFFERED_OK = False
    return _BUFFERED_OK


# ---------------------------------------------------------------------------
# Fused kernel: full n-layer linear stack for one row tile.
# ---------------------------------------------------------------------------
def _proj_fused_kernel(x_ref, *refs, n_layers: int, apply_act: bool):
    # x_ref: (tm, in_p)
    # refs = (w0, b0, w1, b1, ..., o_ref); w_i: (in_p_i, out_p_i), b_i: (1, out_p_i)
    o_ref = refs[-1]
    wb = refs[:-1]

    h = x_ref[...].astype(jnp.float32)
    for i in range(n_layers):
        w = wb[2 * i][...]
        b = wb[2 * i + 1][...]
        h = jnp.dot(h, w, preferred_element_type=jnp.float32) + b  # MXU, no .T
        if apply_act and i < n_layers - 1:
            h = jnp.maximum(h, 0.2 * h)  # LeakyReLU(0.2)
    o_ref[...] = h.astype(o_ref.dtype)


# ---------------------------------------------------------------------------
# Per-layer K/N-tiled matmul kernel (fallback for weight stacks >> VMEM).
# ---------------------------------------------------------------------------
def _linear_tiled_kernel(x_ref, w_ref, b_ref, o_ref, acc_ref, *, apply_act: bool):
    k = pl.program_id(2)

    @pl.when(k == 0)
    def _():
        acc_ref[...] = jnp.zeros_like(acc_ref)

    acc_ref[...] += jnp.dot(x_ref[...], w_ref[...],
                            preferred_element_type=jnp.float32)

    @pl.when(k == pl.num_programs(2) - 1)
    def _():
        h = acc_ref[...] + b_ref[...]
        if apply_act:
            h = jnp.maximum(h, 0.2 * h)  # LeakyReLU(0.2)
        o_ref[...] = h.astype(o_ref.dtype)


# ---------------------------------------------------------------------------
# Cached pallas_call builders (construct + jit once per static config).
# ---------------------------------------------------------------------------
@functools.lru_cache(maxsize=None)
def _build_fused_call(Np, tm, pdims, n_layers, apply_act, use_buffered,
                      vmem_limit, out_dtype_name):
    out_dtype = jnp.dtype(out_dtype_name)
    kernel = functools.partial(_proj_fused_kernel,
                               n_layers=n_layers, apply_act=apply_act)

    in_specs = [pl.BlockSpec((tm, pdims[0]), lambda r: (r, 0))]
    for i in range(n_layers):
        pin, pout = pdims[i], pdims[i + 1]
        kw = {"pipeline_mode": pl.Buffered(1)} if use_buffered else {}
        # constant index_map: weight/bias stay resident across the row grid
        in_specs.append(pl.BlockSpec((pin, pout), lambda r: (0, 0), **kw))
        in_specs.append(pl.BlockSpec((1, pout), lambda r: (0, 0), **kw))

    cparams = {"dimension_semantics": ("parallel",)}
    if vmem_limit:
        cparams["vmem_limit_bytes"] = int(vmem_limit)

    # Padded (i.e. actually executed) work for the scheduler hint.
    flops = sum(2 * Np * pdims[i] * pdims[i + 1] for i in range(n_layers))
    bytes_accessed = 4 * (
        Np * pdims[0]
        + Np * pdims[-1]
        + sum(pdims[i] * pdims[i + 1] + pdims[i + 1] for i in range(n_layers))
    )
    cost = pl.CostEstimate(flops=flops, transcendentals=0,
                           bytes_accessed=bytes_accessed)

    call = pl.pallas_call(
        kernel,
        out_shape=jax.ShapeDtypeStruct((Np, pdims[-1]), out_dtype),
        grid_spec=pltpu.PrefetchScalarGridSpec(
            num_scalar_prefetch=0,
            grid=(Np // tm,),
            in_specs=in_specs,
            out_specs=pl.BlockSpec((tm, pdims[-1]), lambda r: (r, 0)),
        ),
        compiler_params=pltpu.CompilerParams(**cparams),
        cost_estimate=cost,
    )
    return jax.jit(call)


@functools.lru_cache(maxsize=None)
def _build_tiled_linear(Mp, Kp, Op, tm, tk, tn, apply_act, vmem_limit,
                        out_dtype_name):
    out_dtype = jnp.dtype(out_dtype_name)
    kernel = functools.partial(_linear_tiled_kernel, apply_act=apply_act)

    cparams = {"dimension_semantics": ("parallel", "parallel", "arbitrary")}
    if vmem_limit:
        cparams["vmem_limit_bytes"] = int(vmem_limit)

    cost = pl.CostEstimate(
        flops=2 * Mp * Kp * Op, transcendentals=0,
        bytes_accessed=4 * (Mp * Kp + Kp * Op + Op + Mp * Op))

    call = pl.pallas_call(
        kernel,
        out_shape=jax.ShapeDtypeStruct((Mp, Op), out_dtype),
        grid_spec=pltpu.PrefetchScalarGridSpec(
            num_scalar_prefetch=0,
            grid=(Mp // tm, Op // tn, Kp // tk),
            in_specs=[
                pl.BlockSpec((tm, tk), lambda i, j, k: (i, k)),
                pl.BlockSpec((tk, tn), lambda i, j, k: (k, j)),
                pl.BlockSpec((1, tn), lambda i, j, k: (0, j)),
            ],
            out_specs=pl.BlockSpec((tm, tn), lambda i, j, k: (i, j)),
            scratch_shapes=[pltpu.VMEM((tm, tn), jnp.float32)],
        ),
        compiler_params=pltpu.CompilerParams(**cparams),
        cost_estimate=cost,
    )
    return jax.jit(call)


# ---------------------------------------------------------------------------
# Parameter padding (done once at init by Projection; skips aligned copies).
# ---------------------------------------------------------------------------
def _pad_params(weights, biases, pdims):
    params = []
    for i, (w, b) in enumerate(zip(weights, biases)):
        pin, pout = pdims[i], pdims[i + 1]
        if w.shape == (pin, pout):
            wp = w
        else:
            wp = jnp.zeros((pin, pout), jnp.float32).at[:w.shape[0], :w.shape[1]].set(w)
        if b.shape[0] == pout:
            bp = b.reshape(1, pout)
        else:
            bp = jnp.zeros((1, pout), jnp.float32).at[0, :b.shape[0]].set(b)
        params += [wp, bp]
    return tuple(params)


def _pick_tile(p, cap):
    """Largest tile <= cap that divides p (p is a multiple of 128)."""
    t = min(cap, p)
    while p % t != 0:
        t //= 2
    return max(t, 128)


# ---------------------------------------------------------------------------
# Forward on pre-padded parameters.
# ---------------------------------------------------------------------------
def _projection_padded(x, padded_params, pdims, *, out_f, apply_act,
                       force_tiled=False):
    N, in_f = x.shape
    n_layers = len(padded_params) // 2
    max_pd = max(pdims)

    physical_vmem = _tpu_vmem_bytes()
    vmem_cap = int(0.85 * physical_vmem)  # headroom for compiler scratch

    # --- adaptive row tile; ensure >= 2 grid steps for megacore sharding ----
    if max_pd <= 512:
        tm_cap = 1024
    elif max_pd <= 1024:
        tm_cap = 512
    else:
        tm_cap = 256
    tm = min(tm_cap, max(8, _round_up(N, 8)))
    if N > 8:
        tm = min(tm, max(8, _round_up((N + 1) // 2, 8)))
    Np = _round_up(N, tm)

    use_buffered = _buffered_supported()
    wb_bufs = 1 if use_buffered else 2

    # --- VMEM residency estimate (fused path) --------------------------------
    weight_bytes = 4 * sum(pdims[i] * pdims[i + 1] + pdims[i + 1]
                           for i in range(n_layers))
    est = (4 * 2 * tm * pdims[0]        # x tile, double-buffered
           + 4 * 2 * tm * pdims[-1]     # out tile, double-buffered
           + 4 * 2 * tm * max_pd        # live inter-layer activation scratch
           + wb_bufs * weight_bytes)    # resident (or double-buffered) weights

    use_tiled = force_tiled or est > vmem_cap

    # --- x padding: skip the copy entirely when already aligned -------------
    if N == Np and in_f == pdims[0]:
        xp = x
    else:
        xp = jnp.zeros((Np, pdims[0]), x.dtype).at[:N, :in_f].set(x)

    dtype_name = jnp.dtype(x.dtype).name

    if not use_tiled:
        vmem_limit = 0
        if est > (12 << 20):  # below v5e's 16 MiB scoped default, with margin
            vmem_limit = int(min(max(2 * est, est + (8 << 20)), vmem_cap))
        call = _build_fused_call(Np, tm, tuple(pdims), n_layers, apply_act,
                                 use_buffered, vmem_limit, dtype_name)
        yp = call(xp, *padded_params)
    else:
        # Per-layer K/N-tiled matmul chain: weights streamed (double-buffered)
        # through VMEM, f32 accumulator, bias + activation fused in last K step.
        h = xp
        for i in range(n_layers):
            wp = padded_params[2 * i]
            bp = padded_params[2 * i + 1]
            Kp, Op = pdims[i], pdims[i + 1]
            tk = _pick_tile(Kp, 512)
            tn = _pick_tile(Op, 256)
            act = apply_act and (i < n_layers - 1)
            call = _build_tiled_linear(Np, Kp, Op, tm, tk, tn, act, 0,
                                       dtype_name)
            h = call(h, wp, bp)
        yp = h

    return yp[:N, :out_f]


def projection_forward(x, weights, biases, *, layer_type: int,
                       force_tiled: bool = False):
    """Generic entry point (pads weights per call).

    x:          (N, in_planes) float32
    weights[i]: (in_i, out_i)  float32   (pre-transposed: y = x @ w + b)
    biases[i]:  (out_i,)       float32
    """
    dims = [x.shape[1]] + [w.shape[1] for w in weights]
    pdims = tuple(_round_up(d, 128) for d in dims)
    padded = _pad_params(weights, biases, pdims)
    return _projection_padded(x, padded, pdims,
                              out_f=weights[-1].shape[1],
                              apply_act=layer_type > 1,
                              force_tiled=force_tiled)


# ---------------------------------------------------------------------------
# Projection module (JAX/Pallas port of the PyTorch class).
# ---------------------------------------------------------------------------
class Projection:
    def __init__(self, key, in_planes, out_planes=None, n_layers=1, layer_type=0):
        if out_planes is None:
            out_planes = in_planes
        self.n_layers = n_layers
        self.layer_type = layer_type
        self.out_planes = out_planes
        self.weights = []   # stored pre-transposed: (in_f, out_f)
        self.biases = []
        _out = None
        for i in range(n_layers):
            _in = in_planes if i == 0 else _out
            _out = out_planes
            key, wk, bk = jax.random.split(key, 3)
            # xavier_normal_ (matches init_weight); symmetric in fan_in/fan_out
            std = math.sqrt(2.0 / (_in + _out))
            w = std * jax.random.normal(wk, (_in, _out), dtype=jnp.float32)
            # PyTorch default nn.Linear bias init: U(-1/sqrt(fan_in), 1/sqrt(fan_in))
            bound = 1.0 / math.sqrt(_in)
            b = jax.random.uniform(bk, (_out,), jnp.float32, -bound, bound)
            self.weights.append(w)
            self.biases.append(b)

        # Pad weights/biases ONCE (cached); avoids a per-call HBM pass.
        dims = [in_planes] + [w.shape[1] for w in self.weights]
        self.pdims = tuple(_round_up(d, 128) for d in dims)
        self.padded_params = _pad_params(self.weights, self.biases, self.pdims)

    def __call__(self, x, force_tiled=False):
        return _projection_padded(x, self.padded_params, self.pdims,
                                  out_f=self.out_planes,
                                  apply_act=self.layer_type > 1,
                                  force_tiled=force_tiled)

    def reference(self, x):
        """Plain-JAX reference for correctness checking."""
        for i, (w, b) in enumerate(zip(self.weights, self.biases)):
            x = x @ w + b
            if (i < self.n_layers - 1) and (self.layer_type > 1):
                x = jnp.where(x >= 0.0, x, 0.2 * x)
        return x


if __name__ == "__main__":
    key = jax.random.PRNGKey(0)
    key, xkey, pkey, x2key = jax.random.split(key, 4)

    # SimpleNet flattens NCHW feature maps to (B*H*W, C) before projection.
    # B=2, H=W=8, C=32 -> x: (128, 32)
    in_planes = 32
    out_planes = 32
    n_layers = 2
    layer_type = 2  # > 1 -> LeakyReLU(0.2) between layers

    x = jax.random.normal(xkey, (2 * 8 * 8, in_planes), dtype=jnp.float32)

    proj = Projection(pkey, in_planes, out_planes,
                      n_layers=n_layers, layer_type=layer_type)

    # Fused resident-weights path.
    y = jax.block_until_ready(proj(x))
    y_ref = proj.reference(x)
    assert y.shape == (2 * 8 * 8, out_planes)
    assert jnp.allclose(y, y_ref, atol=1e-4, rtol=1e-4)

    # Padded-rows path (row count not a multiple of 8).
    x2 = jax.random.normal(x2key, (100, in_planes), dtype=jnp.float32)
    y2 = jax.block_until_ready(proj(x2))
    assert y2.shape == (100, out_planes)
    assert jnp.allclose(y2, proj.reference(x2), atol=1e-4, rtol=1e-4)

    # K/N-tiled per-layer fallback (the path used when the weight stack
    # would not fit in VMEM, e.g. 4096x4096 layers on v7x) — exercised here
    # at small shapes for correctness.
    y3 = jax.block_until_ready(proj(x, force_tiled=True))
    assert jnp.allclose(y3, y_ref, atol=1e-4, rtol=1e-4)

    print("KERNEL_OK")
</pallas_src>

<mosaic_0001>
module attributes {stable_mosaic.version = 11 : i64} {
  func.func @_k(%arg0: i32, %arg1: memref<8x128xf32, #tpu.memory_space<vmem>>, %arg2: memref<8x128xf32, #tpu.memory_space<vmem>>, %arg3: memref<8x128xf32, #tpu.memory_space<vmem>>) attributes {dimension_semantics = [#tpu.dimension_semantics<arbitrary>], iteration_bounds = array<i64: 1>, scalar_prefetch = 0 : i64, scratch_operands = 0 : i64, tpu.core_type = #tpu.core_type<tc>, window_params = [{pipeline_mode = #tpu.pipeline_mode<synchronous>, transform_indices = @transform_0, window_bounds = array<i64: 8, 128>}, {pipeline_mode = #tpu.pipeline_mode<synchronous>, transform_indices = @transform_1, window_bounds = array<i64: 8, 128>}, {pipeline_mode = #tpu.pipeline_mode<synchronous>, transform_indices = @transform_2, window_bounds = array<i64: 8, 128>}]} {
    %c0 = arith.constant 0 : index
    %c0_0 = arith.constant 0 : index
    %0 = vector.load %arg1[%c0, %c0_0] : memref<8x128xf32, #tpu.memory_space<vmem>>, vector<8x128xf32>
    %c0_1 = arith.constant 0 : index
    %c0_2 = arith.constant 0 : index
    %1 = vector.load %arg2[%c0_1, %c0_2] : memref<8x128xf32, #tpu.memory_space<vmem>>, vector<8x128xf32>
    %2 = arith.addf %0, %1 : vector<8x128xf32>
    %c0_3 = arith.constant 0 : index
    %c0_4 = arith.constant 0 : index
    %3 = vector.load %arg3[%c0_3, %c0_4] : memref<8x128xf32, #tpu.memory_space<vmem>>, vector<8x128xf32>
    tpu.vector_store %arg3[%c0_3, %c0_4], %2 {strides = array<i32>} : memref<8x128xf32, #tpu.memory_space<vmem>>, vector<8x128xf32>,
    return
  }
  func.func @transform_0(%arg0: i32) -> (i32, i32) {
    %c0_i32 = arith.constant 0 : i32
    %c0_i32_0 = arith.constant 0 : i32
    %c0_i32_1 = arith.constant 0 : i32
    return %c0_i32, %c0_i32_0 : i32, i32
  }
  func.func @transform_1(%arg0: i32) -> (i32, i32) {
    %c0_i32 = arith.constant 0 : i32
    %c0_i32_0 = arith.constant 0 : i32
    %c0_i32_1 = arith.constant 0 : i32
    return %c0_i32, %c0_i32_0 : i32, i32
  }
  func.func @transform_2(%arg0: i32) -> (i32, i32) {
    %c0_i32 = arith.constant 0 : i32
    %c0_i32_0 = arith.constant 0 : i32
    %c0_i32_1 = arith.constant 0 : i32
    return %c0_i32, %c0_i32_0 : i32, i32
  }
}

module attributes {stable_mosaic.version = 11 : i64} {
  func.func @_proj_fused_kernel(%arg0: i32, %arg1: memref<64x128xf32, #tpu.memory_space<vmem>>, %arg2: memref<128x128xf32, #tpu.memory_space<vmem>>, %arg3: memref<1x128xf32, #tpu.memory_space<vmem>>, %arg4: memref<128x128xf32, #tpu.memory_space<vmem>>, %arg5: memref<1x128xf32, #tpu.memory_space<vmem>>, %arg6: memref<64x128xf32, #tpu.memory_space<vmem>>) attributes {dimension_semantics = [#tpu.dimension_semantics<parallel>], iteration_bounds = array<i64: 2>, scalar_prefetch = 0 : i64, scratch_operands = 0 : i64, tpu.core_type = #tpu.core_type<tc>, window_params = [{transform_indices = @transform_0, window_bounds = array<i64: 64, 128>}, {pipeline_mode = #tpu.pipeline_mode<synchronous>, transform_indices = @transform_1, window_bounds = array<i64: 128, 128>}, {pipeline_mode = #tpu.pipeline_mode<synchronous>, transform_indices = @transform_2, window_bounds = array<i64: 1, 128>}, {pipeline_mode = #tpu.pipeline_mode<synchronous>, transform_indices = @transform_3, window_bounds = array<i64: 128, 128>}, {pipeline_mode = #tpu.pipeline_mode<synchronous>, transform_indices = @transform_4, window_bounds = array<i64: 1, 128>}, {transform_indices = @transform_5, window_bounds = array<i64: 64, 128>}]} {
    %c0 = arith.constant 0 : index
    %c0_0 = arith.constant 0 : index
    %0 = vector.load %arg1[%c0, %c0_0] : memref<64x128xf32, #tpu.memory_space<vmem>>, vector<64x128xf32>
    %c0_1 = arith.constant 0 : index
    %c0_2 = arith.constant 0 : index
    %1 = vector.load %arg2[%c0_1, %c0_2] : memref<128x128xf32, #tpu.memory_space<vmem>>, vector<128x128xf32>
    %c0_3 = arith.constant 0 : index
    %c0_4 = arith.constant 0 : index
    %2 = vector.load %arg3[%c0_3, %c0_4] : memref<1x128xf32, #tpu.memory_space<vmem>>, vector<1x128xf32>
    %cst = arith.constant dense<0.000000e+00> : vector<64x128xf32>
    %3 = tpu.matmul %0, %1, %cst {dimension_numbers = #tpu.dot_dimension_numbers<[1], [0], [0], [1], [0, 0, 1, 1], [], []>} : vector<64x128xf32>, vector<128x128xf32>, vector<64x128xf32> -> vector<64x128xf32>
    %4 = vector.broadcast %2 : vector<1x128xf32> to vector<64x128xf32>
    %5 = arith.addf %3, %4 : vector<64x128xf32>
    %cst_5 = arith.constant 2.000000e-01 : f32
    %6 = vector.broadcast %cst_5 : f32 to vector<64x128xf32>
    %7 = arith.mulf %6, %5 : vector<64x128xf32>
    %8 = arith.maximumf %5, %7 : vector<64x128xf32>
    %c0_6 = arith.constant 0 : index
    %c0_7 = arith.constant 0 : index
    %9 = vector.load %arg4[%c0_6, %c0_7] : memref<128x128xf32, #tpu.memory_space<vmem>>, vector<128x128xf32>
    %c0_8 = arith.constant 0 : index
    %c0_9 = arith.constant 0 : index
    %10 = vector.load %arg5[%c0_8, %c0_9] : memref<1x128xf32, #tpu.memory_space<vmem>>, vector<1x128xf32>
    %cst_10 = arith.constant dense<0.000000e+00> : vector<64x128xf32>
    %11 = tpu.matmul %8, %9, %cst_10 {dimension_numbers = #tpu.dot_dimension_numbers<[1], [0], [0], [1], [0, 0, 1, 1], [], []>} : vector<64x128xf32>, vector<128x128xf32>, vector<64x128xf32> -> vector<64x128xf32>
    %12 = vector.broadcast %10 : vector<1x128xf32> to vector<64x128xf32>
    %13 = arith.addf %11, %12 : vector<64x128xf32>
    %c0_11 = arith.constant 0 : index
    %c0_12 = arith.constant 0 : index
    %14 = vector.load %arg6[%c0_11, %c0_12] : memref<64x128xf32, #tpu.memory_space<vmem>>, vector<64x128xf32>
    tpu.vector_store %arg6[%c0_11, %c0_12], %13 {strides = array<i32>} : memref<64x128xf32, #tpu.memory_space<vmem>>, vector<64x128xf32>,
    return
  }
  func.func @transform_0(%arg0: i32) -> (i32, i32) {
    %c0_i32 = arith.constant 0 : i32
    %c0_i32_0 = arith.constant 0 : i32
    return %arg0, %c0_i32 : i32, i32
  }
  func.func @transform_1(%arg0: i32) -> (i32, i32) {
    %c0_i32 = arith.constant 0 : i32
    %c0_i32_0 = arith.constant 0 : i32
    %c0_i32_1 = arith.constant 0 : i32
    return %c0_i32, %c0_i32_0 : i32, i32
  }
  func.func @transform_2(%arg0: i32) -> (i32, i32) {
    %c0_i32 = arith.constant 0 : i32
    %c0_i32_0 = arith.constant 0 : i32
    %c0_i32_1 = arith.constant 0 : i32
    return %c0_i32, %c0_i32_0 : i32, i32
  }
  func.func @transform_3(%arg0: i32) -> (i32, i32) {
    %c0_i32 = arith.constant 0 : i32
    %c0_i32_0 = arith.constant 0 : i32
    %c0_i32_1 = arith.constant 0 : i32
    return %c0_i32, %c0_i32_0 : i32, i32
  }
  func.func @transform_4(%arg0: i32) -> (i32, i32) {
    %c0_i32 = arith.constant 0 : i32
    %c0_i32_0 = arith.constant 0 : i32
    %c0_i32_1 = arith.constant 0 : i32
    return %c0_i32, %c0_i32_0 : i32, i32
  }
  func.func @transform_5(%arg0: i32) -> (i32, i32) {
    %c0_i32 = arith.constant 0 : i32
    %c0_i32_0 = arith.constant 0 : i32
    return %arg0, %c0_i32 : i32, i32
  }
}

</mosaic_0001>

<bundles_post_ra>
// kernel: tpu_custom_call.1
= control target key start
LH: loop header
LB: loop body
LE: loop exit
PB: predicated region body
PF: predicated region fallthrough
CT: control target
= control target key end

     0   :  { %7 = vsyncpa [#allocation3], 0  ;;  %s152_s0 = inlined_call_operand.hbm [shape: f32[8,128], index: 0, kind: input, shape index: {}]   ;;  %s153_s1 = inlined_call_operand.hbm [shape: f32[8,128], index: 1, kind: input, shape index: {}]   ;;  %s154_s2 = inlined_call_operand.hbm [shape: f32[8,128], index: 2, kind: output, shape index: {}]  }
   0x1   :  { %8 = vsyncpa [#allocation6], 0 }
   0x2   :  { %9 = vsyncpa [#allocation4], 0  ;;  %s125_s9 = smov [#allocation2]   ;;  %s126_s11 = smov [#allocation5]  }
   0x3   :  { %s16_s10 = sshll.u32 %s125_s9, 4  ;;  %s26_s12 = sshll.u32 %s126_s11, 4  ;;  %s17_s10 = int_to_ptr.vmem [resolvable:$true] %s16_s10  ;;  %s27_s12 = int_to_ptr.vmem [resolvable:$true] %s26_s12 }
   0x4   :  { %s67_s13 = scalar_lea.vmem %s17_s10, 128  ;;  %p72_p1 = scmp.lt.s32.totalorder %s17_s10, %s17_s10 }
   0x5   :  { %p68_p0 = scmp.ne.s32.totalorder %s17_s10, %s67_s13  ;;  %p73_p2 = scmp.lt.s32.totalorder %s67_s13, %s67_s13 }
   0x7   :  { %p74_p3 = por %p73_p2, %p72_p1 }
   0x9   :  { %p75_p4 = pnand %p74_p3, %p68_p0 }
   0xb   :  { %78 = shalt.err (!%p75_p4)
}
   0xc   :  { %19 = dma.hbm_to_vmem [thread:$0]  %s152_s0, 128, %s17_s10, [#allocation3]  }
   0xd   :  { %s87_s16 = scalar_lea.vmem %s27_s12, 128  ;;  %p92_p6 = scmp.lt.s32.totalorder %s27_s12, %s27_s12 }
   0xe   :  { %p88_p5 = scmp.ne.s32.totalorder %s27_s12, %s87_s16  ;;  %p93_p7 = scmp.lt.s32.totalorder %s87_s16, %s87_s16 }
  0x10   :  { %p94_p8 = por %p93_p7, %p92_p6 }
  0x12   :  { %p95_p9 = pnand %p94_p8, %p88_p5 }
  0x14   :  { %98 = shalt.err (!%p95_p9)
}
  0x15   :  { %29 = dma.hbm_to_vmem [thread:$0]  %s153_s1, 128, %s27_s12, [#allocation6]  }
  0x16   :  { %119 = dma.done.wait [#allocation3], 128  }
  0x17   :  { %120 = vsyncadd [#allocation3], 4294967168 }
  0x18   :  { %121 = dma.done.wait [#allocation6], 128  }
  0x19   :  { %122 = vsyncadd [#allocation6], 4294967168  ;;  %s127_s19 = smov [#allocation7]   ;;  %v36_v0 = vld [vmem:[#allocation2] sm:$0xff]  ;;  %v37_v1 = vld [vmem:[#allocation5] sm:$0xff] }
  0x1a   :  { %s46_s20 = sshll.u32 %s127_s19, 4  ;;  %v38_v2 = vadd.f32 %v37_v1, %v36_v0  ;;  %s47_s20 = int_to_ptr.vmem [resolvable:$true] %s46_s20 }
  0x1b   :  { %s99_s0 = scalar_lea.vmem %s47_s20, 128  ;;  %p104_p11 = scmp.lt.s32.totalorder %s47_s20, %s47_s20 }
  0x1c   :  { %39 = vst [vmem:[#allocation7] sm:$0xff] %v38_v2  ;;  %p100_p10 = scmp.ne.s32.totalorder %s47_s20, %s99_s0  ;;  %p105_p12 = scmp.lt.s32.totalorder %s99_s0, %s99_s0 }
  0x1e   :  { %p106_p13 = por %p105_p12, %p104_p11 }
  0x20   :  { %p107_p0 = pnand %p106_p13, %p100_p10 }
  0x22   :  { %110 = shalt.err (!%p107_p0)
}
  0x23   :  { %49 = dma.vmem_to_hbm [thread:$0]  %s47_s20, 128, %s154_s2, [#allocation4]  }
  0x24   :  { %123 = dma.done.wait [#allocation4], 128  }
  0x25   :  { %124 = vsyncadd [#allocation4], 4294967168 }
  0x26   :  { %53 = vsyncpa [#allocation3], 1 }
  0x27   :  { %54 = vsyncpa [#allocation6], 1 }
  0x28   :  { %55 = vsyncpa [#allocation4], 1 }

// kernel: tpu_custom_call.1
= control target key start
LH: loop header
LB: loop body
LE: loop exit
PB: predicated region body
PF: predicated region fallthrough
CT: control target
= control target key end

     0   :  { %10 = vsyncpa [#allocation3], 0  ;;  %s1302_s0 = inlined_call_operand.hbm [shape: f32[128,128], index: 0, kind: input, shape index: {}]   ;;  %s1303_s1 = inlined_call_operand.hbm [shape: f32[128,128], index: 1, kind: input, shape index: {}]   ;;  %s1304_s2 = inlined_call_operand.vmem [shape: f32[1,128], index: 2, kind: input, shape index: {}]   ;;  %s1305_s3 = inlined_call_operand.hbm [shape: f32[128,128], index: 3, kind: input, shape index: {}]   ;;  %s1306_s4 = inlined_call_operand.vmem [shape: f32[1,128], index: 4, kind: input, shape index: {}]   ;;  %s1307_s5 = inlined_call_operand.hbm [shape: f32[128,128], index: 5, kind: output, shape index: {}]  }
   0x1   :  { %12 = vsyncpa [#allocation3 + $0x1], 0 }
   0x2   :  { %13 = vsyncpa [#allocation6], 0 }
   0x3   :  { %14 = vsyncpa [#allocation4], 0 }
   0x4   :  { %16 = vsyncpa [#allocation4 + $0x1], 0  ;;  %s1085_s18 = smov 0   ;;  %s1087_s19 = smov 0  }
   0x5   :  { %s1089_s20 = smov 0   ;;  %s1091_s21 = smov 0  }
   0x6 LB: > { %s1106_s22 = sadd.s32 4294967295, %s1045_s21   ;;  %s668_s23 = sadd.s32 4294967294, %s1045_s21   ;;  %s1045_s21 = sphi %s1091_s21, %s1330_s21   ;;  %s1041_s20 = sphi %s1089_s20, %s1329_s20   ;;  %s1037_s19 = sphi %s1087_s19, %s1328_s19   ;;  %s1033_s18 = sphi %s1085_s18, %s1327_s18  }
   0x7   : > { %p42_p0 = scmp.ne.s32.totalorder %s1037_s19, %s1033_s18  ;;  %p1308_p1 = scmp.eq.s32.totalorder %s1106_s22, 0 }
   0x8   : > { %p150_p2 = scmp.eq.s32.totalorder %s1106_s22, 1  ;;  %p156_p3 = scmp.eq.s32.totalorder %s668_s23, 1 }
   0x9   : > { %p1115_p4 = por %p1308_p1, %p42_p0  ;;  %p669_p5 = scmp.ge.s32.totalorder %s1045_s21, 1 }
   0xa   : > { %p1120_p6 = por %p156_p3, %p42_p0  ;;  %p163_p7 = scmp.lt.s32.totalorder %s1045_s21, 3 }
   0xb   : > { %s1313_s24 = scalar_select %p1115_p4, 1, 0 }
   0xc   : > { %s1314_s25 = scalar_select %p1120_p6, 1, 0 }
   0xd   : > { %p1125_p8 = pnand %p669_p5, %p163_p7  ;;  %s1047_s27 = smov [#allocation5]  }
   0xe   : > { %s175_s28 = sshll.u32 %s1047_s27, 4  ;;  %s1048_s30 = smov [#allocation7]   ;;  %s176_s28 = int_to_ptr.vmem [resolvable:$true] %s175_s28 }
   0xf   : > { %s1315_s26 = scalar_select %p1125_p8, 1, 0 }
  0x10   : > { %p838_p9 = pneg %p1125_p8  ;;  %s191_s6 = sshll.u32 %s1048_s30, 4  ;;  %s192_s6 = int_to_ptr.vmem [resolvable:$true] %s191_s6 }
  0x11   : > { %s908_s7 = scalar_lea.vmem %s176_s28, 2048  ;;  %p916_p5 = scmp.lt.s32.totalorder %s176_s28, %s176_s28 }
  0x12   : > { %p1134_p11 = pnand %p838_p9, %p1308_p1  ;;  %p909_p13 = scmp.ne.s32.totalorder %s176_s28, %s908_s7 }
  0x13   : > { %p917_p7 = scmp.lt.s32.totalorder %s908_s7, %s908_s7 }
  0x14   : > { %p899_p12 = pneg %p1134_p11 }
  0x15   : > { %p918_p10 = por %p917_p7, %p916_p5 }
  0x16   : > { %p911_p0 = pnand %p909_p13, %p899_p12 }
  0x18   : > { %p912_p3 = pneg %p911_p0 }
  0x1a   : > { %p919_p9 = pnand %p918_p10, %p912_p3 }
  0x1c   : > { %922 = shalt.err (!%p919_p9)
}
  0x1d   : > { %s1309_s8 = smov 128   ;;  %s1050_s9 = smov 8  }
  0x1e   : > { %841 = dma.hbm_to_vmem [thread:$0]  (!%p1134_p11), %s1303_s1, 2048, %s176_s28, [#allocation6], %s1309_s8, %s1309_s8, %s1050_s9  }
  0x1f   : > { %s934_s12 = scalar_lea.vmem %s192_s6, 2048  ;;  %p942_p10 = scmp.lt.s32.totalorder %s192_s6, %s192_s6 }
  0x20   : > { %p935_p13 = scmp.ne.s32.totalorder %s192_s6, %s934_s12  ;;  %p943_p3 = scmp.lt.s32.totalorder %s934_s12, %s934_s12 }
  0x22   : > { %p937_p0 = pnand %p935_p13, %p899_p12  ;;  %p944_p7 = por %p943_p3, %p942_p10 }
  0x24   : > { %p938_p5 = pneg %p937_p0 }
  0x26   : > { %p945_p9 = pnand %p944_p7, %p938_p5 }
  0x28   : > { %948 = shalt.err (!%p945_p9)
}
  0x29   : > { %844 = dma.hbm_to_vmem [thread:$0]  (!%p1134_p11), %s1305_s3, 2048, %s192_s6, [#allocation6], %s1309_s8, %s1309_s8, %s1050_s9  }
  0x2a   : > { %s1163_s15 = sadd.s32 1, %s1045_s21   ;;  %s29_s16 = sadd.s32 1, %s1041_s20 }
  0x2b   : > { %s26_s17 = ssub.s32 %s1045_s21, %s1163_s15  ;;  %p36_p12 = scmp.ne.s32.totalorder %s1041_s20, %s1037_s19 }
  0x2c   : > { %p27_p13 = scmp.eq.s32.totalorder %s26_s17, 0  ;;  %p37_p0 = scmp.eq.s32.totalorder %s1045_s21, 0 }
  0x2d   : > { %p1173_p5 = por %p150_p2, %p36_p12  ;;  %p855_p10 = scmp.lt.s32.totalorder %s1045_s21, 2 }
  0x2e   : > { %s1179_s27 = scalar_select %p27_p13, %s1041_s20, %s29_s16  }
  0x2f   : > { %s1317_s23 = scalar_select %p1173_p5, 1, 0 }
  0x30   : > { %p38_p3 = por %p37_p0, %p36_p12  ;;  %s208_s28 = sand.u32 1, %s1041_s20  }
  0x31   : > { %s673_s29 = sshll.u32 %s208_s28, 6  ;;  %s688_s30 = sshll.u32 %s1045_s21, 10 }
  0x32   : > { %s1186_s10 = scalar_lea.hbm %s1302_s0, %s688_s30  ;;  %s212_s11 = scalar_lea.vmem [#allocation2], %s673_s29 }
  0x33   : > { %s219_s12 = sshll.u32 %s212_s11, 4  ;;  %p1190_p2 = pnand %p855_p10, %p38_p3  ;;  %s1188_s12 = int_to_ptr.vmem [resolvable:$true] %s219_s12 }
  0x34   : > { %s1194_s14 = scalar_lea.sflag [#allocation3], %s208_s28  ;;  %s949_s16 = scalar_lea.hbm %s1186_s10, 1024 }
  0x35   : > { %p950_p11 = scmp.ne.s32.totalorder %s1186_s10, %s949_s16  ;;  %p951_p7 = pneg %p1190_p2 }
  0x36   : > { %s954_s29 = scalar_lea.hbm %s1302_s0, 2048  ;;  %p955_p13 = scmp.lt.s32.totalorder %s1186_s10, %s1302_s0 }
  0x37   : > { %p952_p9 = pnand %p951_p7, %p950_p11  ;;  %p956_p0 = scmp.lt.s32.totalorder %s954_s29, %s949_s16 }
  0x39   : > { %p953_p12 = pneg %p952_p9  ;;  %p957_p10 = por %p956_p0, %p955_p13 }
  0x3b   : > { %p958_p3 = pnand %p957_p10, %p953_p12 }
  0x3d   : > { %961 = shalt.err (!%p958_p3)
}
  0x3e   : > { %s962_s28 = scalar_lea.vmem %s1188_s12, 1024  ;;  %s1051_s11 = smov [#allocation2]  }
  0x3f   : > { %p963_p1 = scmp.ne.s32.totalorder %s1188_s12, %s962_s28  ;;  %s967_s8 = sshll.u32 %s1051_s11, 4  ;;  %s968_s8 = int_to_ptr.vmem [resolvable:$false] %s967_s8 }
  0x40   : > { %s969_s17 = scalar_lea.vmem %s968_s8, 2048  ;;  %p970_p9 = scmp.lt.s32.totalorder %s1188_s12, %s968_s8 }
  0x41   : > { %p965_p6 = pnand %p963_p1, %p951_p7  ;;  %p971_p5 = scmp.lt.s32.totalorder %s969_s17, %s962_s28 }
  0x43   : > { %p966_p11 = pneg %p965_p6  ;;  %p972_p4 = por %p971_p5, %p970_p9 }
  0x45   : > { %p973_p8 = pnand %p972_p4, %p966_p11 }
  0x47   : > { %976 = shalt.err (!%p973_p8)
}
  0x48   : > { %s1319_s16 = smov 128   ;;  %p1320_p1 = scmp.ne.s32.totalorder %s1315_s26, 0 }
  0x49   : > { %848 = dma.hbm_to_vmem [thread:$0]  (!%p1190_p2), %s1186_s10, 1024, %s1188_s12, %s1194_s14, %s1319_s16, %s1319_s16, %s1050_s9  }
  0x4a   : > { %231 = sbr.rel (%p1320_p1) target bundleno = 541 (0x21d), region = 40  ;;  %s1221_s30 = sand.u32 (!%p1320_p1), 1, %s1037_s19  }
  0x4b   : > { %s677_s8 = sshll.u32 (!%p1320_p1), %s1221_s30, 6  ;;  %s234_s29 = scalar_lea.sflag (!%p1320_p1), [#allocation3], %s1221_s30 }
  0x4c   : > { %s1227_s13 = scalar_lea.vmem (!%p1320_p1), [#allocation2], %s677_s8  ;;  %p1321_p4 = scmp.ne.s32.totalorder (!%p1320_p1), %s1313_s24, 0 }
  0x4f   : > { %1020 = dma.done.wait (%p1321_p4), %s234_s29, 1024  }
  0x50   : > { %1022 = vsyncadd (%p1321_p4), %s234_s29, 4294966272  ;;  %p1322_p6 = scmp.eq.s32.totalorder %s1106_s22, 0 }
  0x52   : > { %1024 = dma.done.wait (%p1322_p6), [#allocation6], 4096   ;;  %p1323_p8 = pmov %p1322_p6 }
  0x53   : > { %v297_v0 = vld [vmem:[#allocation5 + $0x78] sm:$0xff]  ;;  %v296_v1 = vld [vmem:[#allocation5 + $0x70] sm:$0xff]  ;;  %v295_v2 = vld [vmem:[#allocation5 + $0x68] sm:$0xff]  ;;  %s271_s12 = scalar_lea.vmem [#allocation8], %s677_s8  ;;  %s689_s6 = sshll.u32 %s1106_s22, 10 }
  0x54   : > { %1026 = vsyncadd (%p1323_p8), [#allocation6], 4294963200  ;;  %738 = vmatprep.subr.mxu0 %v297_v0  ;;  %v294_v3 = vld [vmem:[#allocation5 + $0x60] sm:$0xff]  ;;  %v293_v5 = vld [vmem:[#allocation5 + $0x58] sm:$0xff]  ;;  %s576_s14 = sshll.u32 %s271_s12, 4  ;;  %s1259_s11 = scalar_lea.hbm %s1307_s5, %s689_s6  ;;  %s1254_s14 = int_to_ptr.vmem [resolvable:$true] %s576_s14 }
  0x55   : > { %739 = vmatpush3.msra.mxu0 %v297_v0  ;;  %v274_v4 = vld [vmem:[%s1227_s13] sm:$0xff]  ;;  %v292_v6 = vld [vmem:[#allocation5 + $0x50] sm:$0xff]  ;;  %v441_v7 = vld [vmem:[#allocation7 + $0x78] sm:$0xff]  ;;  %s563_s17 = scalar_lea.sflag [#allocation4], %s1221_s30  ;;  %s977_s16 = scalar_lea.vmem %s1254_s14, 1024 }
  0x56   : > { %740 = vmatprep.subr.mxu0 %v296_v1  ;;  %770 = vmatprep.mubr.f32.mxu0 %v274_v4  ;;  %v440_v8 = vld [vmem:[#allocation7 + $0x70] sm:$0xff]  ;;  %v291_v9 = vld [vmem:[#allocation5 + $0x48] sm:$0xff]  ;;  %v290_v11 = vld [vmem:[#allocation5 + $0x40] sm:$0xff]  ;;  %p978_p5 = scmp.ne.s32.totalorder %s1254_s14, %s977_s16  ;;  %p1324_p2 = scmp.ne.s32.totalorder %s1317_s23, 0 }
  0x57   : > { %741 = vmatpush3.msra.mxu0 %v296_v1  ;;  %782 = vmatprep.subr.mxu1 %v441_v7  ;;  %v439_v10 = vld [vmem:[#allocation7 + $0x68] sm:$0xff]  ;;  %v438_v12 = vld [vmem:[#allocation7 + $0x60] sm:$0xff]  ;;  %v289_v13 = vld [vmem:[#allocation5 + $0x38] sm:$0xff]  ;;  %s1052_s22 = smov [#allocation8]  }
  0x58   : > { %742 = vmatprep.subr.mxu0 %v295_v2  ;;  %783 = vmatpush3.msra.mxu1 %v441_v7  ;;  %v437_v14 = vld [vmem:[#allocation7 + $0x58] sm:$0xff]  ;;  %v288_v15 = vld [vmem:[#allocation5 + $0x30] sm:$0xff]  ;;  %v287_v17 = vld [vmem:[#allocation5 + $0x28] sm:$0xff]  ;;  %p979_p7 = pnand %p978_p5, %p1324_p2  ;;  %s981_s8 = sshll.u32 %s1052_s22, 4  ;;  %s982_s8 = int_to_ptr.vmem [resolvable:$false] %s981_s8 }
  0x59   : > { %743 = vmatpush3.msra.mxu0 %v295_v2  ;;  %784 = vmatprep.subr.mxu1 %v440_v8  ;;  %v436_v16 = vld [vmem:[#allocation7 + $0x50] sm:$0xff]  ;;  %v435_v18 = vld [vmem:[#allocation7 + $0x48] sm:$0xff]  ;;  %v286_v19 = vld [vmem:[#allocation5 + $0x20] sm:$0xff]  ;;  %s983_s29 = scalar_lea.vmem %s982_s8, 2048  ;;  %p984_p13 = scmp.lt.s32.totalorder %s1254_s14, %s982_s8 }
  0x5a   : > { %744 = vmatprep.subr.mxu0 %v294_v3  ;;  %785 = vmatpush3.msra.mxu1 %v440_v8  ;;  %v434_v20 = vld [vmem:[#allocation7 + $0x40] sm:$0xff]  ;;  %v285_v21 = vld [vmem:[#allocation5 + $0x18] sm:$0xff]  ;;  %v284_v23 = vld [vmem:[#allocation5 + $0x10] sm:$0xff]  ;;  %p980_p12 = pneg %p979_p7  ;;  %p985_p0 = scmp.lt.s32.totalorder %s983_s29, %s977_s16 }
  0x5b   : > { %745 = vmatpush3.msra.mxu0 %v294_v3  ;;  %786 = vmatprep.subr.mxu1 %v439_v10  ;;  %v433_v22 = vld [vmem:[#allocation7 + $0x38] sm:$0xff]  ;;  %v432_v24 = vld [vmem:[#allocation7 + $0x30] sm:$0xff]  ;;  %v283_v25 = vld [vmem:[#allocation5 + $0x8] sm:$0xff] }
  0x5c   : > { %746 = vmatprep.subr.mxu0 %v293_v5  ;;  %787 = vmatpush3.msra.mxu1 %v439_v10  ;;  %v431_v26 = vld [vmem:[#allocation7 + $0x28] sm:$0xff]  ;;  %v282_v27 = vld [vmem:[#allocation5] sm:$0xff]  ;;  %v276_v29 = vld [vmem:[%s1227_s13 + $0x10] sm:$0xff]  ;;  %p986_p10 = por %p985_p0, %p984_p13 }
  0x5d   : > { %747 = vmatpush3.msra.mxu0 %v293_v5  ;;  %788 = vmatprep.subr.mxu1 %v438_v12  ;;  %v275_v28 = vld [vmem:[%s1227_s13 + $0x8] sm:$0xff]  ;;  %v277_v30 = vld [vmem:[%s1227_s13 + $0x18] sm:$0xff]  ;;  %v278_v31 = vld [vmem:[%s1227_s13 + $0x20] sm:$0xff] }
  0x5e   : > { %748 = vmatprep.subr.mxu0 %v292_v6  ;;  %789 = vmatpush3.msra.mxu1 %v438_v12  ;;  %v279_v32 = vld [vmem:[%s1227_s13 + $0x28] sm:$0xff]  ;;  %v280_v33 = vld [vmem:[%s1227_s13 + $0x30] sm:$0xff]  ;;  %v281_v34 = vld [vmem:[%s1227_s13 + $0x38] sm:$0xff]  ;;  %p987_p3 = pnand %p986_p10, %p980_p12 }
  0x5f   : > { %749 = vmatpush3.msra.mxu0 %v292_v6  ;;  %790 = vmatprep.subr.mxu1 %v437_v14  ;;  %v430_v35 = vld [vmem:[#allocation7 + $0x20] sm:$0xff]  ;;  %v429_v36 = vld [vmem:[#allocation7 + $0x18] sm:$0xff]  ;;  %v428_v37 = vld [vmem:[#allocation7 + $0x10] sm:$0xff] }
  0x60   : > { %750 = vmatprep.subr.mxu0 %v291_v9  ;;  %791 = vmatpush3.msra.mxu1 %v437_v14  ;;  %v427_v38 = vld [vmem:[#allocation7 + $0x8] sm:$0xff]  ;;  %v426_v39 = vld [vmem:[#allocation7] sm:$0xff] }
  0x61   : > { %751 = vmatpush3.msra.mxu0 %v291_v9  ;;  %792 = vmatprep.subr.mxu1 %v436_v16  ;;  %v681_v40 = vld [vmem:[%s1304_s2] ss:$0 sm:$0xff] }
  0x62   : > { %752 = vmatprep.subr.mxu0 %v290_v11  ;;  %793 = vmatpush3.msra.mxu1 %v436_v16  ;;  %v682_v9 = vld [vmem:[%s1306_s4] ss:$0 sm:$0xff] }
  0x63   : > { %753 = vmatpush3.msra.mxu0 %v290_v11  ;;  %794 = vmatprep.subr.mxu1 %v435_v18 }
  0x64   : > { %754 = vmatprep.subr.mxu0 %v289_v13  ;;  %795 = vmatpush3.msra.mxu1 %v435_v18 }
  0x65   : > { %755 = vmatpush3.msra.mxu0 %v289_v13  ;;  %796 = vmatprep.subr.mxu1 %v434_v20 }
  0x66   : > { %756 = vmatprep.subr.mxu0 %v288_v15  ;;  %797 = vmatpush3.msra.mxu1 %v434_v20 }
  0x67   : > { %757 = vmatpush3.msra.mxu0 %v288_v15  ;;  %798 = vmatprep.subr.mxu1 %v433_v22 }
  0x68   : > { %758 = vmatprep.subr.mxu0 %v287_v17  ;;  %799 = vmatpush3.msra.mxu1 %v433_v22 }
  0x69   : > { %759 = vmatpush3.msra.mxu0 %v287_v17  ;;  %800 = vmatprep.subr.mxu1 %v432_v24 }
  0x6a   : > { %760 = vmatprep.subr.mxu0 %v286_v19  ;;  %801 = vmatpush3.msra.mxu1 %v432_v24 }
  0x6b   : > { %761 = vmatpush3.msra.mxu0 %v286_v19  ;;  %802 = vmatprep.subr.mxu1 %v431_v26 }
  0x6c   : > { %762 = vmatprep.subr.mxu0 %v285_v21  ;;  %803 = vmatpush3.msra.mxu1 %v431_v26 }
  0x6d   : > { %763 = vmatpush3.msra.mxu0 %v285_v21  ;;  %804 = vmatprep.subr.mxu1 %v430_v35 }
  0x6e   : > { %764 = vmatprep.subr.mxu0 %v284_v23  ;;  %805 = vmatpush3.msra.mxu1 %v430_v35 }
  0x6f   : > { %765 = vmatpush3.msra.mxu0 %v284_v23  ;;  %806 = vmatprep.subr.mxu1 %v429_v36 }
  0x70   : > { %766 = vmatprep.subr.mxu0 %v283_v25  ;;  %807 = vmatpush3.msra.mxu1 %v429_v36 }
  0x71   : > { %767 = vmatpush3.msra.mxu0 %v283_v25  ;;  %808 = vmatprep.subr.mxu1 %v428_v37 }
  0x72   : > { %768 = vmatprep.subr.mxu0 %v282_v27  ;;  %809 = vmatpush3.msra.mxu1 %v428_v37 }
  0x73   : > { %769 = vmatpush3.msra.mxu0 %v282_v27  ;;  %810 = vmatprep.subr.mxu1 %v427_v38 }
  0x74   : > { %771 = vmatmul.mubr.f32.vlgmr.msra.gmra.mxu0 %v275_v28  ;;  %811 = vmatpush3.msra.mxu1 %v427_v38 }
  0x75   : > { %773 = vmatprep.mubr.f32.mxu0 %v276_v29  ;;  %812 = vmatprep.subr.mxu1 %v426_v39 }
  0x76   : > { %813 = vmatpush3.msra.mxu1 %v426_v39 }
  0x78   : > { %774 = vmatmul.mubr.f32.gmra.mxu0 %v277_v30 }
  0x79   : > { %776 = vmatprep.mubr.f32.mxu0 %v278_v31 }
  0x7c   : > { %777 = vmatmul.mubr.f32.gmra.mxu0 %v279_v32 }
  0x7d   : > { %779 = vmatprep.mubr.f32.mxu0 %v280_v33 }
  0x80   : > { %780 = vmatmul.mubr.f32.gmra.mxu0 %v281_v34 }
 0x134   : > { %v772_v41 = vpop.f32.mrf.mxu0 }
 0x135   : > { %v377_v42 = vadd.f32 %v772_v41, %v681_v40 }
 0x136   : > { %v371_v43 = vpop.f32.mrf.mxu0 }
 0x137   : > { %v372_v44 = vadd.f32 %v681_v40, %v371_v43  ;;  %v411_v45 = vmul.f32 0.2, %v377_v42 }
 0x138   : > { %v775_v46 = vpop.f32.mrf.mxu0 }
 0x139   : > { %v387_v47 = vadd.f32 %v775_v46, %v681_v40  ;;  %v410_v48 = vmul.f32 0.2, %v372_v44  ;;  %v419_v52 = vmax.f32 %v377_v42, %v411_v45 }
 0x13a   : > { %v381_v49 = vpop.f32.mrf.mxu0 }
 0x13b   : > { %v382_v50 = vadd.f32 %v681_v40, %v381_v49  ;;  %v418_v51 = vmax.f32 %v372_v44, %v410_v48  ;;  %v413_v53 = vmul.f32 0.2, %v387_v47 }
 0x13c   : > { %v778_v54 = vpop.f32.mrf.mxu0 }
 0x13d   : > { %v412_v55 = vmul.f32 0.2, %v382_v50  ;;  %v397_v56 = vadd.f32 %v778_v54, %v681_v40  ;;  %814 = vmatprep.mubr.f32.mxu1 %v418_v51  ;;  %v421_v60 = vmax.f32 %v387_v47, %v413_v53 }
 0x13e   : > { %v391_v57 = vpop.f32.mrf.mxu0  ;;  %815 = vmatmul.mubr.f32.vlgmr.msra.gmra.mxu1 %v419_v52 }
 0x13f   : > { %v420_v58 = vmax.f32 %v382_v50, %v412_v55  ;;  %v392_v59 = vadd.f32 %v681_v40, %v391_v57  ;;  %v415_v61 = vmul.f32 0.2, %v397_v56 }
 0x140   : > { %v781_v62 = vpop.f32.mrf.mxu0 }
 0x141   : > { %v414_v63 = vmul.f32 0.2, %v392_v59  ;;  %v407_v0 = vadd.f32 %v781_v62, %v681_v40  ;;  %817 = vmatprep.mubr.f32.mxu1 %v420_v58  ;;  %v423_v4 = vmax.f32 %v397_v56, %v415_v61 }
 0x142   : > { %v401_v1 = vpop.f32.mrf.mxu0  ;;  %818 = vmatmul.mubr.f32.gmra.mxu1 %v421_v60 }
 0x143   : > { %v422_v2 = vmax.f32 %v392_v59, %v414_v63  ;;  %v402_v3 = vadd.f32 %v681_v40, %v401_v1  ;;  %v417_v5 = vmul.f32 0.2, %v407_v0 }
 0x145   : > { %v416_v6 = vmul.f32 0.2, %v402_v3  ;;  %820 = vmatprep.mubr.f32.mxu1 %v422_v2  ;;  %v425_v8 = vmax.f32 %v407_v0, %v417_v5 }
 0x146   : > { %821 = vmatmul.mubr.f32.gmra.mxu1 %v423_v4 }
 0x147   : > { %v424_v7 = vmax.f32 %v402_v3, %v416_v6 }
 0x149   : > { %823 = vmatprep.mubr.f32.mxu1 %v424_v7 }
 0x14a   : > { %824 = vmatmul.mubr.f32.gmra.mxu1 %v425_v8 }
 0x1fe   : > { %v816_v10 = vpop.f32.mrf.mxu1 }
 0x1ff   : > { %v521_v11 = vadd.f32 %v816_v10, %v682_v9 }
 0x200   : > { %v515_v12 = vpop.f32.mrf.mxu1 }
 0x201   : > { %555 = vst [vmem:[%s271_s12 + $0x8] sm:$0xff] %v521_v11  ;;  %v516_v13 = vadd.f32 %v682_v9, %v515_v12 }
 0x202   : > { %v819_v14 = vpop.f32.mrf.mxu1 }
 0x203   : > { %554 = vst [vmem:[%s271_s12] sm:$0xff] %v516_v13  ;;  %v531_v15 = vadd.f32 %v819_v14, %v682_v9 }
 0x204   : > { %v525_v16 = vpop.f32.mrf.mxu1 }
 0x205   : > { %557 = vst [vmem:[%s271_s12 + $0x18] sm:$0xff] %v531_v15  ;;  %v526_v17 = vadd.f32 %v682_v9, %v525_v16 }
 0x206   : > { %v822_v18 = vpop.f32.mrf.mxu1 }
 0x207   : > { %556 = vst [vmem:[%s271_s12 + $0x10] sm:$0xff] %v526_v17  ;;  %v541_v19 = vadd.f32 %v822_v18, %v682_v9 }
 0x208   : > { %v535_v20 = vpop.f32.mrf.mxu1 }
 0x209   : > { %559 = vst [vmem:[%s271_s12 + $0x28] sm:$0xff] %v541_v19  ;;  %v536_v21 = vadd.f32 %v682_v9, %v535_v20 }
 0x20a   : > { %v825_v22 = vpop.f32.mrf.mxu1 }
 0x20b   : > { %558 = vst [vmem:[%s271_s12 + $0x20] sm:$0xff] %v536_v21  ;;  %v551_v23 = vadd.f32 %v825_v22, %v682_v9 }
 0x20c   : > { %v545_v24 = vpop.f32.mrf.mxu1 }
 0x20d   : > { %561 = vst [vmem:[%s271_s12 + $0x38] sm:$0xff] %v551_v23  ;;  %v546_v25 = vadd.f32 %v682_v9, %v545_v24 }
 0x20f   : > { %560 = vst [vmem:[%s271_s12 + $0x30] sm:$0xff] %v546_v25 }
 0x210   : > { %990 = shalt.err (!%p987_p3)
}
 0x211   : > { %s991_s13 = scalar_lea.hbm %s1259_s11, 1024  ;;  %s995_s9 = scalar_lea.hbm %s1307_s5, 2048 }
 0x212   : > { %p992_p11 = scmp.ne.s32.totalorder %s1259_s11, %s991_s13  ;;  %p996_p4 = scmp.lt.s32.totalorder %s1259_s11, %s1307_s5 }
 0x213   : > { %p997_p6 = scmp.lt.s32.totalorder %s995_s9, %s991_s13 }
 0x214   : > { %p993_p9 = pnand %p992_p11, %p1324_p2 }
 0x215   : > { %p998_p8 = por %p997_p6, %p996_p4 }
 0x216   : > { %p994_p1 = pneg %p993_p9 }
 0x218   : > { %p999_p5 = pnand %p998_p8, %p994_p1 }
 0x21a   : > { %1002 = shalt.err (!%p999_p5)
}
 0x21b   : > { %s1053_s6 = smov 128   ;;  %s1054_s7 = smov 8  }
 0x21c   : > { %836 = dma.vmem_to_hbm [thread:$0]  (%p1324_p2), %s1254_s14, 1024, %s1259_s11, %s563_s17, %s1053_s6, %s1053_s6, %s1054_s7  }
 0x21d PF: > { %s591_s28 = sand.u32 1, %s1033_s18   ;;  %p1325_p7 = scmp.ne.s32.totalorder %s1314_s25, 0 }
 0x21e   : > { %p1326_p12 = scmp.ge.s32.totalorder %s1045_s21, 2  ;;  %s592_s16 = scalar_lea.sflag [#allocation4], %s591_s28 }
 0x220   : > { %p850_p13 = pnand %p1326_p12, %p1325_p7 }
 0x222   : > { %p851_p0 = pneg %p850_p13 }
 0x224   : > { %1028 = dma.done.wait (%p851_p0), %s592_s16, 1024  }
 0x225   : > { %1030 = vsyncadd (%p851_p0), %s592_s16, 4294966272  ;;  %p19_p10 = scmp.ge.s32.totalorder %s1163_s15, 4   ;;  %s1327_s18 = smov %s1037_s19 }
 0x226   : > { %s1328_s19 = smov %s1041_s20  ;;  %s1329_s20 = smov %s1179_s27 }
 0x227   : > { %s1330_s21 = smov %s1163_s15  ;;  %21 = sbr.rel (!%p19_p10) target bundleno = 6 (0x6), region = 93 }
 0x22c   :  { %597 = vsyncpa [#allocation3], 1 }
 0x22d   :  { %599 = vsyncpa [#allocation3 + $0x1], 1 }
 0x22e   :  { %600 = vsyncpa [#allocation6], 1 }
 0x22f   :  { %601 = vsyncpa [#allocation4], 1 }
 0x230   :  { %603 = vsyncpa [#allocation4 + $0x1], 1 }

</bundles_post_ra>
